<compile_context>
chip_gen: v7x
topology: tpu7x:2x2x1
jax: 0.10.0
libtpu: 0.0.40
codegen_flags: <defaults>
</compile_context>

<pallas_src>
import jax
import jax.numpy as jnp
from jax.experimental import pallas as pl
from jax.experimental.pallas import tpu as pltpu


def _round_up(n, m):
    return (n + m - 1) // m * m


def mlp_kernel(x_ref, w1a_ref, w2_ref, b2_ref, w3_ref, b3_ref, o_ref):
    x = x_ref[...]                                           # (1, TB) lane-dense batch

    # Layer 1 on the MXU via bias augmentation: W1aug @ [x; 1] folds the bias into
    # the matmul, leaving only the ReLU on the VPU.
    xaug = jnp.concatenate([x, jnp.ones_like(x)], axis=0)    # (2, TB)
    h1 = jnp.dot(w1a_ref[...], xaug,
                 preferred_element_type=jnp.float32)         # (64, TB)
    h1 = jnp.maximum(h1, 0.0)

    # Layer 2 on the MXU (the only real contraction); bias-add + ReLU on the VPU.
    h2 = jnp.dot(w2_ref[...], h1,
                 preferred_element_type=jnp.float32)         # (32, TB)
    h2 = jnp.maximum(h2 + b2_ref[...], 0.0)

    # Layer 3 on the MXU as (1,32)@(32,TB) instead of a VPU multiply + XLU reduce.
    out = jnp.dot(w3_ref[...], h2,
                  preferred_element_type=jnp.float32)        # (1, TB)
    o_ref[...] = out + b3_ref[...]                           # lane-dense unmasked store


def mlp_forward(x, params, *, tile=None):
    """x: any shape (B, ...) that flattens to (B, 1). Returns (B, 1) float32."""
    B = x.shape[0]
    x2d = x.reshape(B, -1).astype(jnp.float32)               # x.view(B, -1).float()
    assert x2d.shape[1] == 1, "MLP expects flattened feature dim of 1"
    w1a, w2, b2, w3, b3 = params

    # --- Tile selection -----------------------------------------------------
    # Large tiles amortize the per-grid-step overhead; the 16K cap keeps f32
    # intermediates (h1: 64xT, h2: 32xT) well under the v7x scoped-VMEM budget.
    max_tile = 16384 if tile is None else int(tile)
    n_tiles = pl.cdiv(B, max_tile)
    if B >= 2 * 8192:                       # keep >=2 grid steps for v7x megacore
        n_tiles = max(n_tiles, 2)
    tb = _round_up(pl.cdiv(B, n_tiles), 128)  # lane-aligned, minimal padding
    n_tiles = pl.cdiv(B, tb)
    Bp = n_tiles * tb

    # Transpose so batch maps to lanes; pad to a multiple of the tile.
    # TODO(synk): could drop pad/slice by relying on ragged last-block handling;
    # kept explicit for portability (padding is <= ~128 lanes/tile here).
    xt = x2d.T                                               # (1, B)
    if Bp != B:
        xt = jnp.pad(xt, ((0, 0), (0, Bp - B)))

    const = lambda a: pl.BlockSpec(a.shape, lambda i: (0, 0))  # VMEM-resident weights

    out_t = pl.pallas_call(
        mlp_kernel,
        out_shape=jax.ShapeDtypeStruct((1, Bp), jnp.float32),
        grid=(n_tiles,),
        in_specs=[
            pl.BlockSpec((1, tb), lambda i: (0, i)),         # x tile: lane-dense batch
            const(w1a), const(w2), const(b2), const(w3), const(b3),
        ],
        out_specs=pl.BlockSpec((1, tb), lambda i: (0, i)),
        compiler_params=pltpu.CompilerParams(
            dimension_semantics=("parallel",),               # megacore-shard on v7x
            vmem_limit_bytes=32 * 1024 * 1024,               # safe on v5e/v6e/v7x
        ),
    )(xt, w1a, w2, b2, w3, b3)

    return out_t[:, :B].T                                    # back to (B, 1)


def init_params(key):
    """Deterministic init matching torch Linear(1,64), Linear(64,32), Linear(32,1).
    Kernel layout: W1aug (64,2) = [w1 | b1], W2 (32,64), b2 (32,1), W3 (1,32), b3 (1,1)."""
    k1, k2, k3, k4, k5, k6 = jax.random.split(key, 6)

    def uinit(k, shape, fan_in):
        bound = 1.0 / jnp.sqrt(jnp.float32(fan_in))
        return jax.random.uniform(k, shape, jnp.float32, -bound, bound)

    w1 = uinit(k1, (64, 1), 1)
    b1 = uinit(k2, (64, 1), 1)
    w2 = uinit(k3, (32, 64), 64)
    b2 = uinit(k4, (32, 1), 64)
    w3 = uinit(k5, (1, 32), 32)
    b3 = uinit(k6, (1, 1), 32)
    w1aug = jnp.concatenate([w1, b1], axis=1)                # (64, 2) bias-augmented
    return (w1aug, w2, b2, w3, b3)


def mlp_reference(x, params):
    w1a, w2, b2, w3, b3 = params
    w1, b1 = w1a[:, :1], w1a[:, 1:]
    h = x.reshape(x.shape[0], -1).astype(jnp.float32)        # (B, 1)
    h = jnp.maximum(h @ w1.T + b1.T, 0.0)                    # (B, 64)
    h = jnp.maximum(h @ w2.T + b2.T, 0.0)                    # (B, 32)
    return h @ w3.T + b3.T                                   # (B, 1)


if __name__ == "__main__":
    key = jax.random.PRNGKey(0)
    kx, kp = jax.random.split(key)
    params = init_params(kp)

    # Small primary example (consistent with the module: features flatten to 1).
    B = 8
    x = jax.random.normal(kx, (B, 1), dtype=jnp.float32)
    out = jax.block_until_ready(mlp_forward(x, params))
    ref = mlp_reference(x, params)
    assert out.shape == (B, 1)
    assert jnp.allclose(out, ref, atol=1e-4, rtol=1e-4)

    # Non-multiple-of-128 batch (single-tile ragged path).
    B2 = 1111
    x2 = jax.random.normal(kx, (B2, 1), dtype=jnp.float32)
    out2 = jax.block_until_ready(mlp_forward(x2, params))
    assert out2.shape == (B2, 1)
    assert jnp.allclose(out2, mlp_reference(x2, params), atol=1e-4, rtol=1e-4)

    # Larger batch: exercises the multi-tile "parallel" grid (megacore split on v7x).
    B3 = 40000
    x3 = jax.random.normal(kx, (B3, 1), dtype=jnp.float32)
    out3 = jax.block_until_ready(mlp_forward(x3, params))
    assert out3.shape == (B3, 1)
    assert jnp.allclose(out3, mlp_reference(x3, params), atol=1e-4, rtol=1e-4)

    print("KERNEL_OK")
</pallas_src>

<mosaic_0001>
module attributes {stable_mosaic.version = 11 : i64} {
  func.func @mlp_kernel(%arg0: i32, %arg1: memref<1x128xf32, #tpu.memory_space<vmem>>, %arg2: memref<64x2xf32, #tpu.memory_space<vmem>>, %arg3: memref<32x64xf32, #tpu.memory_space<vmem>>, %arg4: memref<32x1xf32, #tpu.memory_space<vmem>>, %arg5: memref<1x32xf32, #tpu.memory_space<vmem>>, %arg6: memref<1x1xf32, #tpu.memory_space<vmem>>, %arg7: memref<1x128xf32, #tpu.memory_space<vmem>>) attributes {dimension_semantics = [#tpu.dimension_semantics<parallel>], iteration_bounds = array<i64: 1>, scalar_prefetch = 0 : i64, scratch_operands = 0 : i64, tpu.core_type = #tpu.core_type<tc>, window_params = [{transform_indices = @transform_0, window_bounds = array<i64: 1, 128>}, {pipeline_mode = #tpu.pipeline_mode<synchronous>, transform_indices = @transform_1, window_bounds = array<i64: 64, 2>}, {pipeline_mode = #tpu.pipeline_mode<synchronous>, transform_indices = @transform_2, window_bounds = array<i64: 32, 64>}, {pipeline_mode = #tpu.pipeline_mode<synchronous>, transform_indices = @transform_3, window_bounds = array<i64: 32, 1>}, {pipeline_mode = #tpu.pipeline_mode<synchronous>, transform_indices = @transform_4, window_bounds = array<i64: 1, 32>}, {pipeline_mode = #tpu.pipeline_mode<synchronous>, transform_indices = @transform_5, window_bounds = array<i64: 1, 1>}, {transform_indices = @transform_6, window_bounds = array<i64: 1, 128>}]} {
    %c0 = arith.constant 0 : index
    %c0_0 = arith.constant 0 : index
    %0 = vector.load %arg1[%c0, %c0_0] : memref<1x128xf32, #tpu.memory_space<vmem>>, vector<1x128xf32>
    %cst = arith.constant 1.000000e+00 : f32
    %1 = vector.broadcast %cst : f32 to vector<1x128xf32>
    %2 = tpu.concatenate %0, %1 in 0 : vector<1x128xf32>, vector<1x128xf32> -> vector<2x128xf32>
    %c0_1 = arith.constant 0 : index
    %c0_2 = arith.constant 0 : index
    %3 = vector.load %arg2[%c0_1, %c0_2] : memref<64x2xf32, #tpu.memory_space<vmem>>, vector<64x2xf32>
    %cst_3 = arith.constant dense<0.000000e+00> : vector<64x128xf32>
    %4 = tpu.matmul %3, %2, %cst_3 {dimension_numbers = #tpu.dot_dimension_numbers<[1], [0], [0], [1], [0, 0, 1, 1], [], []>} : vector<64x2xf32>, vector<2x128xf32>, vector<64x128xf32> -> vector<64x128xf32>
    %cst_4 = arith.constant 0.000000e+00 : f32
    %5 = vector.broadcast %cst_4 : f32 to vector<64x128xf32>
    %6 = arith.maximumf %4, %5 : vector<64x128xf32>
    %c0_5 = arith.constant 0 : index
    %c0_6 = arith.constant 0 : index
    %7 = vector.load %arg3[%c0_5, %c0_6] : memref<32x64xf32, #tpu.memory_space<vmem>>, vector<32x64xf32>
    %cst_7 = arith.constant dense<0.000000e+00> : vector<32x128xf32>
    %8 = tpu.matmul %7, %6, %cst_7 {dimension_numbers = #tpu.dot_dimension_numbers<[1], [0], [0], [1], [0, 0, 1, 1], [], []>} : vector<32x64xf32>, vector<64x128xf32>, vector<32x128xf32> -> vector<32x128xf32>
    %c0_8 = arith.constant 0 : index
    %c0_9 = arith.constant 0 : index
    %9 = vector.load %arg4[%c0_8, %c0_9] : memref<32x1xf32, #tpu.memory_space<vmem>>, vector<32x1xf32>
    %10 = vector.broadcast %9 : vector<32x1xf32> to vector<32x128xf32>
    %11 = arith.addf %8, %10 : vector<32x128xf32>
    %cst_10 = arith.constant 0.000000e+00 : f32
    %12 = vector.broadcast %cst_10 : f32 to vector<32x128xf32>
    %13 = arith.maximumf %11, %12 : vector<32x128xf32>
    %c0_11 = arith.constant 0 : index
    %c0_12 = arith.constant 0 : index
    %14 = vector.load %arg5[%c0_11, %c0_12] : memref<1x32xf32, #tpu.memory_space<vmem>>, vector<1x32xf32>
    %cst_13 = arith.constant dense<0.000000e+00> : vector<1x128xf32>
    %15 = tpu.matmul %14, %13, %cst_13 {dimension_numbers = #tpu.dot_dimension_numbers<[1], [0], [0], [1], [0, 0, 1, 1], [], []>} : vector<1x32xf32>, vector<32x128xf32>, vector<1x128xf32> -> vector<1x128xf32>
    %c0_14 = arith.constant 0 : index
    %c0_15 = arith.constant 0 : index
    %16 = vector.load %arg6[%c0_14, %c0_15] : memref<1x1xf32, #tpu.memory_space<vmem>>, vector<1x1xf32>
    %17 = vector.broadcast %16 : vector<1x1xf32> to vector<1x128xf32>
    %18 = arith.addf %15, %17 : vector<1x128xf32>
    %c0_16 = arith.constant 0 : index
    %c0_17 = arith.constant 0 : index
    %19 = vector.load %arg7[%c0_16, %c0_17] : memref<1x128xf32, #tpu.memory_space<vmem>>, vector<1x128xf32>
    tpu.vector_store %arg7[%c0_16, %c0_17], %18 {strides = array<i32>} : memref<1x128xf32, #tpu.memory_space<vmem>>, vector<1x128xf32>,
    return
  }
  func.func @transform_0(%arg0: i32) -> (i32, i32) {
    %c0_i32 = arith.constant 0 : i32
    %c0_i32_0 = arith.constant 0 : i32
    return %c0_i32, %arg0 : i32, i32
  }
  func.func @transform_1(%arg0: i32) -> (i32, i32) {
    %c0_i32 = arith.constant 0 : i32
    %c0_i32_0 = arith.constant 0 : i32
    %c0_i32_1 = arith.constant 0 : i32
    return %c0_i32, %c0_i32_0 : i32, i32
  }
  func.func @transform_2(%arg0: i32) -> (i32, i32) {
    %c0_i32 = arith.constant 0 : i32
    %c0_i32_0 = arith.constant 0 : i32
    %c0_i32_1 = arith.constant 0 : i32
    return %c0_i32, %c0_i32_0 : i32, i32
  }
  func.func @transform_3(%arg0: i32) -> (i32, i32) {
    %c0_i32 = arith.constant 0 : i32
    %c0_i32_0 = arith.constant 0 : i32
    %c0_i32_1 = arith.constant 0 : i32
    return %c0_i32, %c0_i32_0 : i32, i32
  }
  func.func @transform_4(%arg0: i32) -> (i32, i32) {
    %c0_i32 = arith.constant 0 : i32
    %c0_i32_0 = arith.constant 0 : i32
    %c0_i32_1 = arith.constant 0 : i32
    return %c0_i32, %c0_i32_0 : i32, i32
  }
  func.func @transform_5(%arg0: i32) -> (i32, i32) {
    %c0_i32 = arith.constant 0 : i32
    %c0_i32_0 = arith.constant 0 : i32
    %c0_i32_1 = arith.constant 0 : i32
    return %c0_i32, %c0_i32_0 : i32, i32
  }
  func.func @transform_6(%arg0: i32) -> (i32, i32) {
    %c0_i32 = arith.constant 0 : i32
    %c0_i32_0 = arith.constant 0 : i32
    return %c0_i32, %arg0 : i32, i32
  }
}

</mosaic_0001>

<bundles_post_ra>
// kernel: tpu_custom_call.1
= control target key start
LH: loop header
LB: loop body
LE: loop exit
PB: predicated region body
PF: predicated region fallthrough
CT: control target
= control target key end

     0   :  { %s670_s0 = inlined_call_operand.vmem [shape: f32[1,128], index: 0, kind: input, shape index: {}]   ;;  %s671_s1 = inlined_call_operand.vmem [shape: f32[64,2], index: 1, kind: input, shape index: {}]   ;;  %s672_s2 = inlined_call_operand.vmem [shape: f32[32,64], index: 2, kind: input, shape index: {}]   ;;  %s673_s3 = inlined_call_operand.vmem [shape: f32[32,1], index: 3, kind: input, shape index: {}]   ;;  %s674_s4 = inlined_call_operand.vmem [shape: f32[1,32], index: 4, kind: input, shape index: {}]   ;;  %s675_s5 = inlined_call_operand.<no memory space> [shape: f32[1,1], index: 5, kind: input, shape index: {}]   ;;  %s676_s6 = inlined_call_operand.hbm [shape: f32[1,128], index: 6, kind: output, shape index: {}]  }
   0x1   :  { %v11_v0 = vstv %s675_s5 }
   0x2   :  { %12 = vst [vmem:[#allocation2] sm:$0x1] %v11_v0 }
   0x3   :  { %v26_v1 = vld [vmem:[%s670_s0] sm:$0x1]  ;;  %vm27_vm0 = vcmask 1040384   ;;  %vm62_vm1 = vcmask 1041408   ;;  %vm37_vm2 = vcmask 15360   ;;  %v30_v4 = vld [vmem:[%s671_s1 + $0x8] sm:$0xff] }
   0x4   :  { %v29_v2 = vld [vmem:[%s671_s1] sm:$0xff]  ;;  %v28_v3 = vsel %vm27_vm0, %v26_v1, 1.0  ;;  %v31_v5 = vld [vmem:[%s671_s1 + $0x10] sm:$0xff] }
   0x5   :  { %451 = vmatprep.mubr.msk.f32.mxu0 %vm37_vm2, %v29_v2  ;;  %449 = vmatprep.subr.msk.mxu0 %vm62_vm1, %v28_v3 }
   0x6   :  { %450 = vmatpush3.msk.msra.mxu0 %vm62_vm1, %v28_v3 }
   0x7   :  { %13 = vsyncpa [#allocation4], 0  ;;  %452 = vmatmul.mubr.msk.f32.vlgmr.msra.gmra.mrb[0].mxu0 %vm37_vm2, %v30_v4  ;;  %v32_v6 = vld [vmem:[%s671_s1 + $0x18] sm:$0xff]  ;;  %v33_v7 = vld [vmem:[%s671_s1 + $0x20] sm:$0xff]  ;;  %vm207_vm3 = vcmask 523264   ;;  %v549_v13 = vmov 0   ;;  %v316_v62 = vlaneseq }
   0x8   :  { %454 = vmatprep.mubr.msk.f32.mxu0 %vm37_vm2, %v31_v5  ;;  %v34_v8 = vld [vmem:[%s671_s1 + $0x28] sm:$0xff]  ;;  %v35_v9 = vld [vmem:[%s671_s1 + $0x30] sm:$0xff]  ;;  %v36_v10 = vld [vmem:[%s671_s1 + $0x38] sm:$0xff]  ;;  %523 = vset.pattern.permute.xlu0 %v549_v13  ;;  %v550_v41 = vmov 0.0|0.0   ;;  %vm551_vm4 = vmmov 0   ;;  %v552_v42 = vmov 0.0  }
   0x9   :  { %v179_v11 = vld [vmem:[%s672_s2] sm:$0xff]  ;;  %524 = vset.pattern.permute.xlu1 %v549_v13  ;;  %v185_v14 = vld [vmem:[%s673_s3 + $0x10] sm:$0xff]  ;;  %v184_v15 = vld [vmem:[%s673_s3 + $0x8] sm:$0xff]  ;;  %512 = vmatprep.subr.bf16.mxu0 %v550_v41  ;;  %vm320_vm5 = vcmask 261120   ;;  %v317_v63 = vshrl.u32 %v316_v62, 7  ;;  %s553_s29 = smov [#allocation3]  }
   0xa   :  { %479 = vmatprep.mubr.msk.f32.mxu1 %vm207_vm3, %v179_v11  ;;  %v183_v12 = vld [vmem:[%s673_s3] sm:$0xff]  ;;  %199 = vperm.xlu1 %524, %v185_v14   ;;  %v186_v16 = vld [vmem:[%s673_s3 + $0x18] sm:$0xff]  ;;  %v180_v38 = vld [vmem:[%s672_s2 + $0x8] sm:$0xff]  ;;  %s401_s0 = sshll.u32 %s553_s29, 4  ;;  %s402_s0 = int_to_ptr.vmem [resolvable:$true] %s401_s0 }
   0xb   :  { %455 = vmatmul.mubr.msk.f32.gmra.mrb[2].mxu0 %vm37_vm2, %v32_v6  ;;  %189 = vperm.xlu0 %523, %v183_v12   ;;  %v310_v17 = vld [vmem:[#allocation2] sm:$0x1]  ;;  %v181_v39 = vld [vmem:[%s672_s2 + $0x10] sm:$0xff]  ;;  %v182_v40 = vld [vmem:[%s672_s2 + $0x18] sm:$0xff]  ;;  %v318_v0 = vsub.s32 0, %v317_v63  ;;  %s525_s30 = scalar_lea.vmem %s402_s0, 16  ;;  %p530_p1 = scmp.lt.s32.totalorder %s402_s0, %s402_s0 }
   0xc   :  { %457 = vmatprep.mubr.msk.f32.mxu0 %vm37_vm2, %v33_v7  ;;  %v309_v61 = vld [vmem:[%s674_s4] sm:$0x1]  ;;  %p526_p0 = scmp.ne.s32.totalorder %s402_s0, %s525_s30  ;;  %s529_s7 = scalar_lea.vmem %s402_s0, 32 }
   0xd   :  { %p531_p2 = scmp.lt.s32.totalorder %s529_s7, %s525_s30 }
   0xe   :  { %204 = vperm.xlu1 %524, %v186_v16  }
   0xf   :  { %458 = vmatmul.mubr.msk.f32.gmra.mrb[4].mxu0 %vm37_vm2, %v34_v8  ;;  %194 = vperm.xlu0 %523, %v184_v15   ;;  %p532_p3 = por %p531_p2, %p530_p1 }
  0x10   :  { %460 = vmatprep.mubr.msk.f32.mxu0 %vm37_vm2, %v35_v9 }
  0x11   :  { %p533_p4 = pnand %p532_p3, %p526_p0 }
  0x13   :  { %461 = vmatmul.mubr.msk.f32.gmra.mrb[6].mxu0 %vm37_vm2, %v36_v10  ;;  %313 = vperm.xlu0 %523, %v310_v17  }
  0x14   :  { %493 = vmatprep.mubr.msk.f32.mxu0 %vm551_vm4, %v552_v42 }
  0x89   :  { %v200_v44 = vpop.permute.xlu1 %199 }
  0x8a   :  { %v190_v43 = vpop.permute.xlu0 %189 }
  0x8d   :  { %v205_v53 = vpop.permute.xlu1 %204 }
  0x8e   :  { %v195_v45 = vpop.permute.xlu0 %194 }
  0x92   :  { %v314_v1 = vpop.permute.xlu0 %313 }
  0x93   :  { %v319_v2 = vrot.slane %v314_v1, %v318_v0 }
  0xda   :  { %v453_v18 = vpop.f32.mrb[0].mxu0 }
  0xdb   :  { %v172_v19 = vmax.f32 %v453_v18, 0.0  ;;  %v132_v20 = vpop.f32.mrb[1].mxu0 }
  0xdc   :  { %v171_v21 = vmax.f32 %v132_v20, 0.0 }
  0xde   :  { %v456_v22 = vpop.f32.mrb[2].mxu0  ;;  %v496_v23 = vpack.c.bf16 %v172_v19, %v171_v21 }
  0xdf   :  { %v174_v24 = vmax.f32 %v456_v22, 0.0  ;;  %v142_v25 = vpop.f32.mrb[3].mxu0 }
  0xe0   :  { %v173_v26 = vmax.f32 %v142_v25, 0.0  ;;  %497 = vmatprep.subr.bf16.mxu1 %v496_v23 }
  0xe1   :  { %499 = vmatpush3.bf16.msra.mxu1 %v496_v23 }
  0xe2   :  { %v500_v27 = vpack.c.bf16 %v174_v24, %v173_v26  ;;  %v459_v28 = vpop.f32.mrb[4].mxu0 }
  0xe3   :  { %v176_v29 = vmax.f32 %v459_v28, 0.0  ;;  %v152_v30 = vpop.f32.mrb[5].mxu0 }
  0xe4   :  { %v175_v31 = vmax.f32 %v152_v30, 0.0  ;;  %501 = vmatprep.subr.bf16.mxu1 %v500_v27 }
  0xe5   :  { %503 = vmatpush3.bf16.msra.mxu1 %v500_v27 }
  0xe6   :  { %v504_v32 = vpack.c.bf16 %v176_v29, %v175_v31  ;;  %v462_v33 = vpop.f32.mrb[6].mxu0 }
  0xe7   :  { %v178_v34 = vmax.f32 %v462_v33, 0.0  ;;  %v162_v35 = vpop.f32.mrb[7].mxu0 }
  0xe8   :  { %v177_v36 = vmax.f32 %v162_v35, 0.0  ;;  %505 = vmatprep.subr.bf16.mxu1 %v504_v32 }
  0xe9   :  { %507 = vmatpush3.bf16.msra.mxu1 %v504_v32 }
  0xea   :  { %v508_v37 = vpack.c.bf16 %v178_v34, %v177_v36 }
  0xec   :  { %509 = vmatprep.subr.bf16.mxu1 %v508_v37 }
  0xed   :  { %511 = vmatpush3.bf16.msra.mxu1 %v508_v37 }
  0xf0   :  { %480 = vmatmul.mubr.msk.f32.vlgmr.msra.gmra.mrb[0].mxu1 %vm207_vm3, %v180_v38 }
  0xf1   :  { %482 = vmatprep.mubr.msk.f32.mxu1 %vm207_vm3, %v181_v39 }
  0xf4   :  { %483 = vmatmul.mubr.msk.f32.gmra.mrb[2].mxu1 %vm207_vm3, %v182_v40 }
 0x1c3   :  { %v481_v46 = vpop.f32.mrb[0].mxu1 }
 0x1c4   :  { %v292_v47 = vadd.f32 %v481_v46, %v195_v45  ;;  %v286_v48 = vpop.f32.mrb[1].mxu1 }
 0x1c5   :  { %v287_v49 = vadd.f32 %v286_v48, %v190_v43 }
 0x1c6   :  { %v306_v50 = vmax.f32 %v292_v47, 0.0 }
 0x1c7   :  { %v305_v51 = vmax.f32 %v287_v49, 0.0  ;;  %v484_v52 = vpop.f32.mrb[2].mxu1 }
 0x1c8   :  { %v302_v54 = vadd.f32 %v484_v52, %v205_v53  ;;  %v296_v55 = vpop.f32.mrb[3].mxu1 }
 0x1c9   :  { %v513_v56 = vpack.c.bf16 %v306_v50, %v305_v51  ;;  %v297_v57 = vadd.f32 %v296_v55, %v200_v44 }
 0x1ca   :  { %v308_v58 = vmax.f32 %v302_v54, 0.0 }
 0x1cb   :  { %v307_v59 = vmax.f32 %v297_v57, 0.0  ;;  %514 = vmatpush3.bf16.msra.mxu0 %v513_v56 }
 0x1cc   :  { %515 = vmatprep.subr.bf16.mxu0 %v550_v41 }
 0x1cd   :  { %v516_v60 = vpack.c.bf16 %v308_v58, %v307_v59 }
 0x1cf   :  { %517 = vmatpush3.bf16.msra.mxu0 %v516_v60 }
 0x1d2   :  { %494 = vmatmul.mubr.msk.f32.vlgmr.msra.gmra.mrb[8].mxu0 %vm320_vm5, %v309_v61 }
 0x2a5   :  { %v390_v3 = vpop.f32.mrb[8].mxu0 }
 0x2a6   :  { %v391_v4 = vadd.f32 %v390_v3, %v319_v2  ;;  %v495_v5 = vpop.f32.mrb[9].mxu0 }
 0x2a8   :  { %394 = vst [vmem:[#allocation3] sm:$0x1] %v391_v4 }
 0x2a9   :  { %536 = shalt.err (!%p533_p4)
}
 0x2aa   :  { %s537_s9 = scalar_lea.hbm %s676_s6, 16 }
 0x2ab   :  { %p538_p5 = scmp.ne.s32.totalorder %s676_s6, %s537_s9  ;;  %p541_p6 = scmp.lt.u32.totalorder %s537_s9, %s676_s6 }
 0x2ad   :  { %p543_p7 = pnand %p541_p6, %p538_p5 }
 0x2af   :  { %546 = shalt.err (!%p543_p7)
}
 0x2b0   :  { %404 = dma.vmem_to_hbm [thread:$0]  %s402_s0, 16, %s676_s6, [#allocation4]  }
 0x2b1   :  { %547 = dma.done.wait [#allocation4], 16  }
 0x2b2   :  { %548 = vsyncadd [#allocation4], 4294967280 }
 0x2b3   :  { %408 = vsyncpa [#allocation4], 1 }

</bundles_post_ra>
